<compile_context>
chip_gen: v6e
topology: v6e:2x2x1
jax: 0.10.0
libtpu: 0.0.40
codegen_flags: <defaults>
</compile_context>

<pallas_src>
import jax
import jax.numpy as jnp
from jax.experimental import pallas as pl
from jax.experimental.pallas import tpu as pltpu

LANE = 128  # TPU lane width


def _round_up(n, m):
    return ((n + m - 1) // m) * m


# --------------------------------------------------------------------------
# Kernel
# --------------------------------------------------------------------------
def _beta_cvae_kernel(
    # blocked activations
    x_ref, y_ref, eps_ref,
    # resident weights
    w1x_ref, w2_ref, w3_ref, w4z_ref, w5_ref, w6_ref,
    # resident packed biases / y-rows: rows = [b1, w1y, b2, b3, b4, w4y, b5, b6]
    small_ref,
    # outputs
    xrec_ref, ml_ref,
):
    f32 = jnp.float32
    Hp = w2_ref.shape[0]            # padded hidden width
    L = eps_ref.shape[-1]           # true latent width
    Lp = ml_ref.shape[-1] // 2      # padded latent width
    D = xrec_ref.shape[-1]          # true input width

    x = x_ref[...]                  # (TM, D)
    y = y_ref[...]                  # (TM, 1)
    eps = eps_ref[...]              # (TM, L)

    b1 = small_ref[0:1, :Hp]
    w1y = small_ref[1:2, :Hp]
    b2 = small_ref[2:3, :Hp]
    b3 = small_ref[3:4, :2 * Lp]
    b4 = small_ref[4:5, :Hp]
    w4y = small_ref[5:6, :Hp]
    b5 = small_ref[6:7, :Hp]
    b6 = small_ref[7:8, :D]

    # ---------------- encoder ----------------
    # fc1 over cat([x, y]) == x @ W1x + y * W1y_row + b1   (exact)
    h = jnp.dot(x, w1x_ref[...], preferred_element_type=f32)
    h = jnp.maximum(h + y * w1y + b1, 0.0)

    h = jnp.dot(h, w2_ref[...], preferred_element_type=f32) + b2
    h = jnp.maximum(h, 0.0)

    # fused [mean | logvar] projection -> one lane-dense (TM, 2*Lp) slab
    ml = jnp.dot(h, w3_ref[...], preferred_element_type=f32) + b3
    ml_ref[...] = ml

    # ---------------- reparameterize (unpadded latent width) ----------------
    mean = ml[:, :L]
    logvar = ml[:, Lp:Lp + L]
    z = mean + eps * jnp.exp(0.5 * logvar)

    # ---------------- decoder ----------------
    # fc4 over cat([z, y]) == z @ W4z + y * W4y_row + b4   (exact)
    h = jnp.dot(z, w4z_ref[...], preferred_element_type=f32)
    h = jnp.maximum(h + y * w4y + b4, 0.0)

    h = jnp.dot(h, w5_ref[...], preferred_element_type=f32) + b5
    h = jnp.maximum(h, 0.0)

    xrec_ref[...] = jnp.dot(h, w6_ref[...], preferred_element_type=f32) + b6


# --------------------------------------------------------------------------
# Parameter packing
# --------------------------------------------------------------------------
def pack_params(p):
    """Pad hidden to a lane multiple, fuse [mean|logvar] projection, and pack
    all (1, *) bias / y-row vectors into one (8, C) resident array."""
    D, H = p["w1x"].shape
    L = p["w3m"].shape[1]
    Hp = _round_up(H, LANE)
    Lp = _round_up(L, LANE)
    C = max(Hp, 2 * Lp, _round_up(D, LANE))

    def pad2(a, r, c):
        return jnp.pad(a, ((0, r - a.shape[0]), (0, c - a.shape[1])))

    # fused [mean | logvar] projection, each half zero-padded to Lp columns
    w3 = jnp.concatenate([pad2(p["w3m"], H, Lp), pad2(p["w3v"], H, Lp)], axis=1)
    b3 = jnp.concatenate([pad2(p["b3m"], 1, Lp), pad2(p["b3v"], 1, Lp)], axis=1)

    def row(a):
        return pad2(a, 1, C)

    small = jnp.concatenate(
        [row(p["b1"]), row(p["w1y"]), row(p["b2"]), row(b3),
         row(p["b4"]), row(p["w4y"]), row(p["b5"]), row(p["b6"])],
        axis=0,
    )  # (8, C) f32

    return {
        "dims": (D, H, L, Hp, Lp),
        "w1x": pad2(p["w1x"], D, Hp),      # (D,  Hp) -- input dim left unpadded
        "w2": pad2(p["w2"], Hp, Hp),       # (Hp, Hp)
        "w3": pad2(w3, Hp, 2 * Lp),        # (Hp, 2*Lp) fused mean|logvar
        "w4z": pad2(p["w4z"], L, Hp),      # (L,  Hp) -- latent dim left unpadded
        "w5": pad2(p["w5"], Hp, Hp),       # (Hp, Hp)
        "w6": pad2(p["w6"], Hp, D),        # (Hp, D)  -- output dim left unpadded
        "small": small,
    }


_WEIGHT_KEYS = ("w1x", "w2", "w3", "w4z", "w5", "w6", "small")


# --------------------------------------------------------------------------
# Wrapper
# --------------------------------------------------------------------------
def beta_cvae_forward(x, y, eps, packed, *, block_rows=None):
    """Full BetaCVAE forward pass in one Pallas kernel.

    x:   (B, input_dim)  f32
    y:   (B, 1)          f32 conditioning label
    eps: (B, latent_dim) f32 standard-normal noise (reparameterization trick)
    returns (x_recon, mean, logvar)
    """
    D, H, L, Hp, Lp = packed["dims"]
    B = x.shape[0]
    assert x.shape == (B, D) and y.shape == (B, 1) and eps.shape == (B, L)

    # --- batch tile choice: few, big grid steps; even grid length for v7x ---
    if block_rows is None:
        Bp = _round_up(B, 16)
        if Bp <= 512:
            TM = Bp // 2                      # whole batch in exactly 2 steps
        else:
            TM = 256
            Bp = _round_up(Bp, TM)
    else:
        TM = block_rows
        if TM % 8 != 0:
            raise ValueError("block_rows must be a multiple of 8 (f32 sublane)")
        Bp = _round_up(B, TM)
    grid = (Bp // TM,)

    # only the batch axis is ever padded; feature dims stay unpadded
    if Bp != B:
        x = jnp.pad(x, ((0, Bp - B), (0, 0)))
        y = jnp.pad(y, ((0, Bp - B), (0, 0)))
        eps = jnp.pad(eps, ((0, Bp - B), (0, 0)))

    weights = [packed[k] for k in _WEIGHT_KEYS]

    def row_spec(cols):
        return pl.BlockSpec((TM, cols), lambda i: (i, 0))

    def resident_spec(a):
        # full-array block, constant index_map -> stays resident in VMEM
        return pl.BlockSpec(a.shape, lambda i: (0, 0))

    in_specs = [row_spec(D), row_spec(1), row_spec(L)] + [
        resident_spec(w) for w in weights
    ]
    out_specs = (row_spec(D), row_spec(2 * Lp))
    out_shape = (
        jax.ShapeDtypeStruct((Bp, D), jnp.float32),        # x_recon
        jax.ShapeDtypeStruct((Bp, 2 * Lp), jnp.float32),   # [mean | logvar] slab
    )

    # VMEM budget from the actual footprint (double-buffered tiles + resident
    # weights), plus headroom for compiler scratch; capped for v7x (64 MiB).
    elt = 4
    act_tile_bytes = (TM * D + TM * 1 + TM * L + TM * D + TM * 2 * Lp) * elt
    weight_bytes = sum(int(w.size) * elt for w in weights)
    vmem_limit = int(min(64 * 2**20, 2 * act_tile_bytes + 2 * weight_bytes + 8 * 2**20))

    xrec_p, ml_p = pl.pallas_call(
        _beta_cvae_kernel,
        grid=grid,
        in_specs=in_specs,
        out_specs=out_specs,
        out_shape=out_shape,
        compiler_params=pltpu.CompilerParams(
            dimension_semantics=("parallel",),
            vmem_limit_bytes=vmem_limit,
        ),
    )(x, y, eps, *weights)

    x_recon = xrec_p[:B]
    mean = ml_p[:B, :L]
    logvar = ml_p[:B, Lp:Lp + L]
    return x_recon, mean, logvar


# --------------------------------------------------------------------------
# Init (PyTorch nn.Linear style) + pure-JAX f32 reference
# --------------------------------------------------------------------------
def init_params(key, input_dim, hidden_dim, latent_dim):
    """PyTorch-Linear-style init: U(-1/sqrt(fan_in), 1/sqrt(fan_in))."""
    def linear(k, fan_in, fan_out):
        kw, kb = jax.random.split(k)
        bound = 1.0 / jnp.sqrt(fan_in)
        w = jax.random.uniform(kw, (fan_in, fan_out), jnp.float32, -bound, bound)
        b = jax.random.uniform(kb, (1, fan_out), jnp.float32, -bound, bound)
        return w, b

    keys = jax.random.split(key, 7)
    w1, b1 = linear(keys[0], input_dim + 1, hidden_dim)    # fc1
    w2, b2 = linear(keys[1], hidden_dim, hidden_dim)       # fc2
    w3m, b3m = linear(keys[2], hidden_dim, latent_dim)     # fc3_mean
    w3v, b3v = linear(keys[3], hidden_dim, latent_dim)     # fc3_logvar
    w4, b4 = linear(keys[4], latent_dim + 1, hidden_dim)   # fc4
    w5, b5 = linear(keys[5], hidden_dim, hidden_dim)       # fc5
    w6, b6 = linear(keys[6], hidden_dim, input_dim)        # fc6

    return {
        "w1x": w1[:input_dim, :], "w1y": w1[input_dim:, :], "b1": b1,
        "w2": w2, "b2": b2,
        "w3m": w3m, "b3m": b3m,
        "w3v": w3v, "b3v": b3v,
        "w4z": w4[:latent_dim, :], "w4y": w4[latent_dim:, :], "b4": b4,
        "w5": w5, "b5": b5,
        "w6": w6, "b6": b6,
    }


def _reference_forward(x, y, eps, p):
    """Pure-JAX f32 reference mirroring the PyTorch module."""
    h = jax.nn.relu(x @ p["w1x"] + y * p["w1y"] + p["b1"])
    h = jax.nn.relu(h @ p["w2"] + p["b2"])
    mean = h @ p["w3m"] + p["b3m"]
    logvar = h @ p["w3v"] + p["b3v"]
    z = mean + eps * jnp.exp(0.5 * logvar)
    h = jax.nn.relu(z @ p["w4z"] + y * p["w4y"] + p["b4"])
    h = jax.nn.relu(h @ p["w5"] + p["b5"])
    x_recon = h @ p["w6"] + p["b6"]
    return x_recon, mean, logvar


# --------------------------------------------------------------------------
if __name__ == "__main__":
    input_dim = 16
    hidden_dim = 128   # module defaults
    latent_dim = 64
    batch = 64

    key = jax.random.PRNGKey(0)
    k_params, k_x, k_y, k_eps = jax.random.split(key, 4)

    params = init_params(k_params, input_dim, hidden_dim, latent_dim)
    packed = pack_params(params)

    x = jax.random.normal(k_x, (batch, input_dim), jnp.float32)
    # binary conditioning label, as a float column
    y = jax.random.bernoulli(k_y, 0.5, (batch, 1)).astype(jnp.float32)
    # deterministic stand-in for torch.randn_like in reparameterize()
    eps = jax.random.normal(k_eps, (batch, latent_dim), jnp.float32)

    fwd = jax.jit(lambda x_, y_, e_: beta_cvae_forward(x_, y_, e_, packed))
    x_recon, mean, logvar = jax.block_until_ready(fwd(x, y, eps))

    # sanity-check against pure-JAX f32 reference (tolerance covers the
    # TPU MXU's reduced-precision default matmul passes)
    ref_xr, ref_m, ref_lv = _reference_forward(x, y, eps, params)
    assert x_recon.shape == (batch, input_dim)
    assert mean.shape == (batch, latent_dim) and logvar.shape == (batch, latent_dim)
    assert jnp.allclose(x_recon, ref_xr, atol=2e-2, rtol=2e-2)
    assert jnp.allclose(mean, ref_m, atol=2e-2, rtol=2e-2)
    assert jnp.allclose(logvar, ref_lv, atol=2e-2, rtol=2e-2)

    print("KERNEL_OK")
</pallas_src>

<mosaic_0001>
module attributes {stable_mosaic.version = 11 : i64} {
  func.func @_beta_cvae_kernel(%arg0: i32, %arg1: memref<32x16xf32, #tpu.memory_space<vmem>>, %arg2: memref<32x1xf32, #tpu.memory_space<vmem>>, %arg3: memref<32x64xf32, #tpu.memory_space<vmem>>, %arg4: memref<16x128xf32, #tpu.memory_space<vmem>>, %arg5: memref<128x128xf32, #tpu.memory_space<vmem>>, %arg6: memref<128x256xf32, #tpu.memory_space<vmem>>, %arg7: memref<64x128xf32, #tpu.memory_space<vmem>>, %arg8: memref<128x128xf32, #tpu.memory_space<vmem>>, %arg9: memref<128x16xf32, #tpu.memory_space<vmem>>, %arg10: memref<8x256xf32, #tpu.memory_space<vmem>>, %arg11: memref<32x16xf32, #tpu.memory_space<vmem>>, %arg12: memref<32x256xf32, #tpu.memory_space<vmem>>) attributes {dimension_semantics = [#tpu.dimension_semantics<parallel>], iteration_bounds = array<i64: 2>, scalar_prefetch = 0 : i64, scratch_operands = 0 : i64, tpu.core_type = #tpu.core_type<tc>, window_params = [{transform_indices = @transform_0, window_bounds = array<i64: 32, 16>}, {transform_indices = @transform_1, window_bounds = array<i64: 32, 1>}, {transform_indices = @transform_2, window_bounds = array<i64: 32, 64>}, {pipeline_mode = #tpu.pipeline_mode<synchronous>, transform_indices = @transform_3, window_bounds = array<i64: 16, 128>}, {pipeline_mode = #tpu.pipeline_mode<synchronous>, transform_indices = @transform_4, window_bounds = array<i64: 128, 128>}, {pipeline_mode = #tpu.pipeline_mode<synchronous>, transform_indices = @transform_5, window_bounds = array<i64: 128, 256>}, {pipeline_mode = #tpu.pipeline_mode<synchronous>, transform_indices = @transform_6, window_bounds = array<i64: 64, 128>}, {pipeline_mode = #tpu.pipeline_mode<synchronous>, transform_indices = @transform_7, window_bounds = array<i64: 128, 128>}, {pipeline_mode = #tpu.pipeline_mode<synchronous>, transform_indices = @transform_8, window_bounds = array<i64: 128, 16>}, {pipeline_mode = #tpu.pipeline_mode<synchronous>, transform_indices = @transform_9, window_bounds = array<i64: 8, 256>}, {transform_indices = @transform_10, window_bounds = array<i64: 32, 16>}, {transform_indices = @transform_11, window_bounds = array<i64: 32, 256>}]} {
    %c0 = arith.constant 0 : index
    %c0_0 = arith.constant 0 : index
    %0 = vector.load %arg1[%c0, %c0_0] : memref<32x16xf32, #tpu.memory_space<vmem>>, vector<32x16xf32>
    %c0_1 = arith.constant 0 : index
    %c0_2 = arith.constant 0 : index
    %1 = vector.load %arg2[%c0_1, %c0_2] : memref<32x1xf32, #tpu.memory_space<vmem>>, vector<32x1xf32>
    %c0_3 = arith.constant 0 : index
    %c0_4 = arith.constant 0 : index
    %2 = vector.load %arg3[%c0_3, %c0_4] : memref<32x64xf32, #tpu.memory_space<vmem>>, vector<32x64xf32>
    %c0_5 = arith.constant 0 : index
    %c0_6 = arith.constant 0 : index
    %3 = vector.load %arg10[%c0_5, %c0_6] : memref<8x256xf32, #tpu.memory_space<vmem>>, vector<1x128xf32>
    %c1 = arith.constant 1 : index
    %c0_7 = arith.constant 0 : index
    %4 = vector.load %arg10[%c1, %c0_7] : memref<8x256xf32, #tpu.memory_space<vmem>>, vector<1x128xf32>
    %c2 = arith.constant 2 : index
    %c0_8 = arith.constant 0 : index
    %5 = vector.load %arg10[%c2, %c0_8] : memref<8x256xf32, #tpu.memory_space<vmem>>, vector<1x128xf32>
    %c3 = arith.constant 3 : index
    %c0_9 = arith.constant 0 : index
    %6 = vector.load %arg10[%c3, %c0_9] : memref<8x256xf32, #tpu.memory_space<vmem>>, vector<1x256xf32>
    %c4 = arith.constant 4 : index
    %c0_10 = arith.constant 0 : index
    %7 = vector.load %arg10[%c4, %c0_10] : memref<8x256xf32, #tpu.memory_space<vmem>>, vector<1x128xf32>
    %c5 = arith.constant 5 : index
    %c0_11 = arith.constant 0 : index
    %8 = vector.load %arg10[%c5, %c0_11] : memref<8x256xf32, #tpu.memory_space<vmem>>, vector<1x128xf32>
    %c6 = arith.constant 6 : index
    %c0_12 = arith.constant 0 : index
    %9 = vector.load %arg10[%c6, %c0_12] : memref<8x256xf32, #tpu.memory_space<vmem>>, vector<1x128xf32>
    %c7 = arith.constant 7 : index
    %c0_13 = arith.constant 0 : index
    %10 = vector.load %arg10[%c7, %c0_13] : memref<8x256xf32, #tpu.memory_space<vmem>>, vector<1x16xf32>
    %c0_14 = arith.constant 0 : index
    %c0_15 = arith.constant 0 : index
    %11 = vector.load %arg4[%c0_14, %c0_15] : memref<16x128xf32, #tpu.memory_space<vmem>>, vector<16x128xf32>
    %cst = arith.constant dense<0.000000e+00> : vector<32x128xf32>
    %12 = tpu.matmul %0, %11, %cst {dimension_numbers = #tpu.dot_dimension_numbers<[1], [0], [0], [1], [0, 0, 1, 1], [], []>} : vector<32x16xf32>, vector<16x128xf32>, vector<32x128xf32> -> vector<32x128xf32>
    %13 = vector.broadcast %1 : vector<32x1xf32> to vector<32x128xf32>
    %14 = vector.broadcast %4 : vector<1x128xf32> to vector<32x128xf32>
    %15 = arith.mulf %13, %14 : vector<32x128xf32>
    %16 = arith.addf %12, %15 : vector<32x128xf32>
    %17 = vector.broadcast %3 : vector<1x128xf32> to vector<32x128xf32>
    %18 = arith.addf %16, %17 : vector<32x128xf32>
    %cst_16 = arith.constant 0.000000e+00 : f32
    %19 = vector.broadcast %cst_16 : f32 to vector<32x128xf32>
    %20 = arith.maximumf %18, %19 : vector<32x128xf32>
    %c0_17 = arith.constant 0 : index
    %c0_18 = arith.constant 0 : index
    %21 = vector.load %arg5[%c0_17, %c0_18] : memref<128x128xf32, #tpu.memory_space<vmem>>, vector<128x128xf32>
    %cst_19 = arith.constant dense<0.000000e+00> : vector<32x128xf32>
    %22 = tpu.matmul %20, %21, %cst_19 {dimension_numbers = #tpu.dot_dimension_numbers<[1], [0], [0], [1], [0, 0, 1, 1], [], []>} : vector<32x128xf32>, vector<128x128xf32>, vector<32x128xf32> -> vector<32x128xf32>
    %23 = vector.broadcast %5 : vector<1x128xf32> to vector<32x128xf32>
    %24 = arith.addf %22, %23 : vector<32x128xf32>
    %cst_20 = arith.constant 0.000000e+00 : f32
    %25 = vector.broadcast %cst_20 : f32 to vector<32x128xf32>
    %26 = arith.maximumf %24, %25 : vector<32x128xf32>
    %c0_21 = arith.constant 0 : index
    %c0_22 = arith.constant 0 : index
    %27 = vector.load %arg6[%c0_21, %c0_22] : memref<128x256xf32, #tpu.memory_space<vmem>>, vector<128x256xf32>
    %cst_23 = arith.constant dense<0.000000e+00> : vector<32x256xf32>
    %28 = tpu.matmul %26, %27, %cst_23 {dimension_numbers = #tpu.dot_dimension_numbers<[1], [0], [0], [1], [0, 0, 1, 1], [], []>} : vector<32x128xf32>, vector<128x256xf32>, vector<32x256xf32> -> vector<32x256xf32>
    %29 = vector.broadcast %6 : vector<1x256xf32> to vector<32x256xf32>
    %30 = arith.addf %28, %29 : vector<32x256xf32>
    %c0_24 = arith.constant 0 : index
    %c0_25 = arith.constant 0 : index
    %31 = vector.load %arg12[%c0_24, %c0_25] : memref<32x256xf32, #tpu.memory_space<vmem>>, vector<32x256xf32>
    tpu.vector_store %arg12[%c0_24, %c0_25], %30 {strides = array<i32>} : memref<32x256xf32, #tpu.memory_space<vmem>>, vector<32x256xf32>,
    %32 = vector.extract_strided_slice %30 {offsets = [0, 0], sizes = [32, 64], strides = [1, 1]} : vector<32x256xf32> to vector<32x64xf32>
    %33 = vector.extract_strided_slice %30 {offsets = [0, 128], sizes = [32, 64], strides = [1, 1]} : vector<32x256xf32> to vector<32x64xf32>
    %cst_26 = arith.constant 5.000000e-01 : f32
    %34 = vector.broadcast %cst_26 : f32 to vector<32x64xf32>
    %35 = arith.mulf %34, %33 : vector<32x64xf32>
    %36 = math.exp %35 : vector<32x64xf32>
    %37 = arith.mulf %2, %36 : vector<32x64xf32>
    %38 = arith.addf %32, %37 : vector<32x64xf32>
    %c0_27 = arith.constant 0 : index
    %c0_28 = arith.constant 0 : index
    %39 = vector.load %arg7[%c0_27, %c0_28] : memref<64x128xf32, #tpu.memory_space<vmem>>, vector<64x128xf32>
    %cst_29 = arith.constant dense<0.000000e+00> : vector<32x128xf32>
    %40 = tpu.matmul %38, %39, %cst_29 {dimension_numbers = #tpu.dot_dimension_numbers<[1], [0], [0], [1], [0, 0, 1, 1], [], []>} : vector<32x64xf32>, vector<64x128xf32>, vector<32x128xf32> -> vector<32x128xf32>
    %41 = vector.broadcast %1 : vector<32x1xf32> to vector<32x128xf32>
    %42 = vector.broadcast %8 : vector<1x128xf32> to vector<32x128xf32>
    %43 = arith.mulf %41, %42 : vector<32x128xf32>
    %44 = arith.addf %40, %43 : vector<32x128xf32>
    %45 = vector.broadcast %7 : vector<1x128xf32> to vector<32x128xf32>
    %46 = arith.addf %44, %45 : vector<32x128xf32>
    %cst_30 = arith.constant 0.000000e+00 : f32
    %47 = vector.broadcast %cst_30 : f32 to vector<32x128xf32>
    %48 = arith.maximumf %46, %47 : vector<32x128xf32>
    %c0_31 = arith.constant 0 : index
    %c0_32 = arith.constant 0 : index
    %49 = vector.load %arg8[%c0_31, %c0_32] : memref<128x128xf32, #tpu.memory_space<vmem>>, vector<128x128xf32>
    %cst_33 = arith.constant dense<0.000000e+00> : vector<32x128xf32>
    %50 = tpu.matmul %48, %49, %cst_33 {dimension_numbers = #tpu.dot_dimension_numbers<[1], [0], [0], [1], [0, 0, 1, 1], [], []>} : vector<32x128xf32>, vector<128x128xf32>, vector<32x128xf32> -> vector<32x128xf32>
    %51 = vector.broadcast %9 : vector<1x128xf32> to vector<32x128xf32>
    %52 = arith.addf %50, %51 : vector<32x128xf32>
    %cst_34 = arith.constant 0.000000e+00 : f32
    %53 = vector.broadcast %cst_34 : f32 to vector<32x128xf32>
    %54 = arith.maximumf %52, %53 : vector<32x128xf32>
    %c0_35 = arith.constant 0 : index
    %c0_36 = arith.constant 0 : index
    %55 = vector.load %arg9[%c0_35, %c0_36] : memref<128x16xf32, #tpu.memory_space<vmem>>, vector<128x16xf32>
    %cst_37 = arith.constant dense<0.000000e+00> : vector<32x16xf32>
    %56 = tpu.matmul %54, %55, %cst_37 {dimension_numbers = #tpu.dot_dimension_numbers<[1], [0], [0], [1], [0, 0, 1, 1], [], []>} : vector<32x128xf32>, vector<128x16xf32>, vector<32x16xf32> -> vector<32x16xf32>
    %57 = vector.broadcast %10 : vector<1x16xf32> to vector<32x16xf32>
    %58 = arith.addf %56, %57 : vector<32x16xf32>
    %c0_38 = arith.constant 0 : index
    %c0_39 = arith.constant 0 : index
    %59 = vector.load %arg11[%c0_38, %c0_39] : memref<32x16xf32, #tpu.memory_space<vmem>>, vector<32x16xf32>
    tpu.vector_store %arg11[%c0_38, %c0_39], %58 {strides = array<i32>} : memref<32x16xf32, #tpu.memory_space<vmem>>, vector<32x16xf32>,
    return
  }
  func.func @transform_0(%arg0: i32) -> (i32, i32) {
    %c0_i32 = arith.constant 0 : i32
    %c0_i32_0 = arith.constant 0 : i32
    return %arg0, %c0_i32 : i32, i32
  }
  func.func @transform_1(%arg0: i32) -> (i32, i32) {
    %c0_i32 = arith.constant 0 : i32
    %c0_i32_0 = arith.constant 0 : i32
    return %arg0, %c0_i32 : i32, i32
  }
  func.func @transform_2(%arg0: i32) -> (i32, i32) {
    %c0_i32 = arith.constant 0 : i32
    %c0_i32_0 = arith.constant 0 : i32
    return %arg0, %c0_i32 : i32, i32
  }
  func.func @transform_3(%arg0: i32) -> (i32, i32) {
    %c0_i32 = arith.constant 0 : i32
    %c0_i32_0 = arith.constant 0 : i32
    %c0_i32_1 = arith.constant 0 : i32
    return %c0_i32, %c0_i32_0 : i32, i32
  }
  func.func @transform_4(%arg0: i32) -> (i32, i32) {
    %c0_i32 = arith.constant 0 : i32
    %c0_i32_0 = arith.constant 0 : i32
    %c0_i32_1 = arith.constant 0 : i32
    return %c0_i32, %c0_i32_0 : i32, i32
  }
  func.func @transform_5(%arg0: i32) -> (i32, i32) {
    %c0_i32 = arith.constant 0 : i32
    %c0_i32_0 = arith.constant 0 : i32
    %c0_i32_1 = arith.constant 0 : i32
    return %c0_i32, %c0_i32_0 : i32, i32
  }
  func.func @transform_6(%arg0: i32) -> (i32, i32) {
    %c0_i32 = arith.constant 0 : i32
    %c0_i32_0 = arith.constant 0 : i32
    %c0_i32_1 = arith.constant 0 : i32
    return %c0_i32, %c0_i32_0 : i32, i32
  }
  func.func @transform_7(%arg0: i32) -> (i32, i32) {
    %c0_i32 = arith.constant 0 : i32
    %c0_i32_0 = arith.constant 0 : i32
    %c0_i32_1 = arith.constant 0 : i32
    return %c0_i32, %c0_i32_0 : i32, i32
  }
  func.func @transform_8(%arg0: i32) -> (i32, i32) {
    %c0_i32 = arith.constant 0 : i32
    %c0_i32_0 = arith.constant 0 : i32
    %c0_i32_1 = arith.constant 0 : i32
    return %c0_i32, %c0_i32_0 : i32, i32
  }
  func.func @transform_9(%arg0: i32) -> (i32, i32) {
    %c0_i32 = arith.constant 0 : i32
    %c0_i32_0 = arith.constant 0 : i32
    %c0_i32_1 = arith.constant 0 : i32
    return %c0_i32, %c0_i32_0 : i32, i32
  }
  func.func @transform_10(%arg0: i32) -> (i32, i32) {
    %c0_i32 = arith.constant 0 : i32
    %c0_i32_0 = arith.constant 0 : i32
    return %arg0, %c0_i32 : i32, i32
  }
  func.func @transform_11(%arg0: i32) -> (i32, i32) {
    %c0_i32 = arith.constant 0 : i32
    %c0_i32_0 = arith.constant 0 : i32
    return %arg0, %c0_i32 : i32, i32
  }
}

</mosaic_0001>

<bundles_post_ra>
// kernel: _lambda_.1
= control target key start
LH: loop header
LB: loop body
LE: loop exit
PB: predicated region body
PF: predicated region fallthrough
CT: control target
= control target key end

     0   :  { %s2445_s0 = inlined_call_operand.vmem [shape: f32[64,16], index: 0, kind: input, shape index: {}]   ;;  %s2446_s1 = inlined_call_operand.vmem [shape: f32[64,1], index: 1, kind: input, shape index: {}]   ;;  %s2447_s2 = inlined_call_operand.hbm [shape: f32[64,64], index: 2, kind: input, shape index: {}]   ;;  %s2448_s3 = inlined_call_operand.hbm [shape: f32[16,128], index: 3, kind: input, shape index: {}]   ;;  %s2449_s4 = inlined_call_operand.hbm [shape: f32[128,128], index: 4, kind: input, shape index: {}]   ;;  %s2450_s5 = inlined_call_operand.hbm [shape: f32[128,256], index: 5, kind: input, shape index: {}]   ;;  %s2451_s6 = inlined_call_operand.hbm [shape: f32[64,128], index: 6, kind: input, shape index: {}]   ;;  %s2452_s7 = inlined_call_operand.hbm [shape: f32[128,128], index: 7, kind: input, shape index: {}]   ;;  %s2453_s8 = inlined_call_operand.vmem [shape: f32[128,16], index: 8, kind: input, shape index: {}]   ;;  %s2454_s9 = inlined_call_operand.vmem [shape: f32[8,256], index: 9, kind: input, shape index: {}]   ;;  %s2455_s10 = inlined_call_operand.vmem [shape: f32[64,16], index: 10, kind: output, shape index: {0}]   ;;  %s2456_s11 = inlined_call_operand.vmem [shape: f32[64,256], index: 11, kind: output, shape index: {1}]  }
   0x1   :  { %2464 = sst [smem:[#allocation16_spill]] %s2448_s3 }
   0x2   :  { %2465 = sst [smem:[#allocation17_spill]] %s2449_s4 }
   0x3   :  { %17 = vsyncpa [#allocation3], 0 }
   0x4   :  { %19 = vsyncpa [#allocation3 + $0x1], 0 }
   0x5   :  { %20 = vsyncpa [#allocation5], 0 }
   0x6   :  { %21 = vsyncpa [#allocation8], 0 }
   0x7   :  { %22 = vsyncpa [#allocation11], 0  ;;  %s2112_s17 = smov 0   ;;  %s2114_s18 = smov 0  }
   0x8   :  { %s2116_s19 = smov 0   ;;  %s2118_s20 = smov 0  }
   0x9 LB: > { %s2040_s21 = smov [#allocation4]   ;;  %s2457_s23 = sadd.s32 4294967295, %s2038_s20   ;;  %s2038_s20 = sphi %s2118_s20, %s2483_s20   ;;  %s2034_s19 = sphi %s2116_s19, %s2482_s19   ;;  %s2030_s18 = sphi %s2114_s18, %s2481_s18   ;;  %s2026_s17 = sphi %s2112_s17, %s2480_s17  }
   0xa   : > { %s322_s22 = sshll.u32 %s2040_s21, 4  ;;  %p1465_p0 = scmp.ge.s32.totalorder %s2038_s20, 1  ;;  %s323_s22 = int_to_ptr.vmem [resolvable:$true] %s322_s22 }
   0xb   : > { %p2136_p1 = scmp.eq.s32.totalorder %s2457_s23, 0  ;;  %p310_p2 = scmp.lt.s32.totalorder %s2038_s20, 3 }
   0xc   : > { %s2041_s26 = smov [#allocation7]   ;;  %s2042_s29 = smov [#allocation6]  }
   0xd   : > { %s2466_s24 = scalar_select %p2136_p1, 1, 0 }
   0xe   : > { %p2141_p3 = pnand %p1465_p0, %p310_p2  ;;  %s348_s27 = sshll.u32 %s2041_s26, 4  ;;  %s2153_s27 = int_to_ptr.vmem [resolvable:$true] %s348_s27 }
   0xf   : > { %s2155_s30 = sshll.u32 %s2042_s29, 4  ;;  %s1845_s13 = scalar_lea.vmem %s323_s22, 256  ;;  %s336_s30 = int_to_ptr.vmem [resolvable:$true] %s2155_s30 }
  0x10   : > { %s2467_s25 = scalar_select %p2141_p3, 1, 0 }
  0x11   : > { %p1750_p4 = pneg %p2141_p3  ;;  %p1846_p7 = scmp.ne.s32.totalorder %s323_s22, %s1845_s13 }
  0x12   : > { %p1853_p10 = scmp.lt.s32.totalorder %s323_s22, %s323_s22  ;;  %p1854_p11 = scmp.lt.s32.totalorder %s1845_s13, %s1845_s13 }
  0x13   : > { %p2149_p5 = pnand %p1750_p4, %p2136_p1 }
  0x14   : > { %p1855_p12 = por %p1854_p11, %p1853_p10 }
  0x15   : > { %p2159_p6 = pneg %p2149_p5 }
  0x17   : > { %p1848_p8 = pnand %p1846_p7, %p2159_p6 }
  0x19   : > { %p1849_p9 = pneg %p1848_p8 }
  0x1b   : > { %p1856_p13 = pnand %p1855_p12, %p1849_p9 }
  0x1d   : > { %1859 = shalt.err (!%p1856_p13)
}
  0x1e   : > { %s2458_s14 = smov 128   ;;  %s2459_s15 = smov 8  }
  0x1f   : > { %s2470_s3 = sld [smem:[#allocation16_spill]]  ;;  %s1871_s26 = scalar_lea.vmem %s2153_s27, 4096 }
  0x20   : > { %p1872_p0 = scmp.ne.s32.totalorder %s2153_s27, %s1871_s26  ;;  %p1879_p7 = scmp.lt.s32.totalorder %s2153_s27, %s2153_s27 }
  0x21   : > { %p1880_p8 = scmp.lt.s32.totalorder %s1871_s26, %s1871_s26 }
  0x22   : > { %p1874_p2 = pnand %p1872_p0, %p2159_p6 }
  0x23   : > { %p1881_p9 = por %p1880_p8, %p1879_p7 }
  0x24   : > { %p1875_p4 = pneg %p1874_p2 }
  0x25   : > { %1753 = dma.hbm_to_vmem [thread:$0]  (!%p2149_p5), %s2470_s3, 256, %s323_s22, [#allocation5], %s2458_s14, %s2458_s14, %s2459_s15  }
  0x26   : > { %p1882_p10 = pnand %p1881_p9, %p1875_p4 }
  0x28   : > { %1885 = shalt.err (!%p1882_p10)
}
  0x29   : > { %s2045_s29 = smov 256   ;;  %s2046_s13 = smov 16  }
  0x2a   : > { %1759 = dma.hbm_to_vmem [thread:$0]  (!%p2149_p5), %s2450_s5, 4096, %s2153_s27, [#allocation8], %s2045_s29, %s2045_s29, %s2046_s13  }
  0x2b   : > { %s1897_s21 = scalar_lea.vmem %s336_s30, 2048  ;;  %p1905_p0 = scmp.lt.s32.totalorder %s336_s30, %s336_s30 }
  0x2c   : > { %p1898_p11 = scmp.ne.s32.totalorder %s336_s30, %s1897_s21  ;;  %p1906_p2 = scmp.lt.s32.totalorder %s1897_s21, %s1897_s21 }
  0x2e   : > { %p1900_p12 = pnand %p1898_p11, %p2159_p6  ;;  %p1907_p4 = por %p1906_p2, %p1905_p0 }
  0x30   : > { %p1901_p13 = pneg %p1900_p12 }
  0x32   : > { %p1908_p7 = pnand %p1907_p4, %p1901_p13 }
  0x34   : > { %1911 = shalt.err (!%p1908_p7)
}
  0x35   : > { %s2471_s4 = sld [smem:[#allocation17_spill]]  ;;  %s2047_s27 = smov [#allocation9]  }
  0x36   : > { %s361_s29 = sshll.u32 %s2047_s27, 4  ;;  %s2048_s13 = smov [#allocation10]   ;;  %s362_s29 = int_to_ptr.vmem [resolvable:$true] %s361_s29 }
  0x37   : > { %s374_s16 = sshll.u32 %s2048_s13, 4  ;;  %s1923_s22 = scalar_lea.vmem %s362_s29, 1024  ;;  %s375_s16 = int_to_ptr.vmem [resolvable:$true] %s374_s16 }
  0x38   : > { %p1924_p8 = scmp.ne.s32.totalorder %s362_s29, %s1923_s22  ;;  %p1931_p11 = scmp.lt.s32.totalorder %s362_s29, %s362_s29 }
  0x39   : > { %p1932_p12 = scmp.lt.s32.totalorder %s1923_s22, %s1923_s22 }
  0x3a   : > { %p1926_p9 = pnand %p1924_p8, %p2159_p6 }
  0x3b   : > { %1756 = dma.hbm_to_vmem [thread:$0]  (!%p2149_p5), %s2471_s4, 2048, %s336_s30, [#allocation5], %s2458_s14, %s2458_s14, %s2459_s15  }
  0x3c   : > { %p1927_p10 = pneg %p1926_p9  ;;  %p1933_p13 = por %p1932_p12, %p1931_p11 }
  0x3e   : > { %p1934_p0 = pnand %p1933_p13, %p1927_p10 }
  0x40   : > { %1937 = shalt.err (!%p1934_p0)
}
  0x41   : > { %1762 = dma.hbm_to_vmem [thread:$0]  (!%p2149_p5), %s2451_s6, 1024, %s362_s29, [#allocation8], %s2458_s14, %s2458_s14, %s2459_s15  }
  0x42   : > { %s1949_s21 = scalar_lea.vmem %s375_s16, 2048  ;;  %p1957_p8 = scmp.lt.s32.totalorder %s375_s16, %s375_s16 }
  0x43   : > { %p1950_p2 = scmp.ne.s32.totalorder %s375_s16, %s1949_s21  ;;  %p1958_p9 = scmp.lt.s32.totalorder %s1949_s21, %s1949_s21 }
  0x45   : > { %p1952_p4 = pnand %p1950_p2, %p2159_p6  ;;  %p1959_p10 = por %p1958_p9, %p1957_p8 }
  0x47   : > { %p1953_p7 = pneg %p1952_p4 }
  0x49   : > { %p1960_p11 = pnand %p1959_p10, %p1953_p7 }
  0x4b   : > { %1963 = shalt.err (!%p1960_p11)
}
  0x4c   : > { %1765 = dma.hbm_to_vmem [thread:$0]  (!%p2149_p5), %s2452_s7, 2048, %s375_s16, [#allocation11], %s2458_s14, %s2458_s14, %s2459_s15  }
  0x4d   : > { %s2217_s28 = sadd.s32 1, %s2038_s20   ;;  %s87_s29 = sadd.s32 1, %s2034_s19 }
  0x4e   : > { %s84_s12 = ssub.s32 %s2038_s20, %s2217_s28  ;;  %p94_p12 = scmp.ne.s32.totalorder %s2034_s19, %s2030_s18 }
  0x4f   : > { %p85_p6 = scmp.eq.s32.totalorder %s84_s12, 0  ;;  %p95_p13 = scmp.eq.s32.totalorder %s2038_s20, 0 }
  0x50   : > { %p100_p0 = scmp.ne.s32.totalorder %s2030_s18, %s2026_s17  ;;  %p1775_p7 = scmp.lt.s32.totalorder %s2038_s20, 2 }
  0x51   : > { %s2228_s13 = scalar_select %p85_p6, %s2034_s19, %s87_s29  }
  0x52   : > { %p96_p2 = por %p95_p13, %p94_p12  ;;  %p2232_p4 = por %p2136_p1, %p100_p0 }
  0x53   : > { %s412_s23 = sand.u32 1, %s2034_s19   ;;  %s1502_s30 = sshll.u32 %s2038_s20, 9 }
  0x54   : > { %s2472_s22 = scalar_select %p2232_p4, 1, 0 }
  0x55   : > { %s1472_s16 = sshll.u32 %s412_s23, 5  ;;  %s2242_s27 = scalar_lea.hbm %s2447_s2, %s1502_s30 }
  0x56   : > { %s416_s17 = scalar_lea.vmem [#allocation2], %s1472_s16  ;;  %p2246_p5 = pnand %p1775_p7, %p96_p2 }
  0x57   : > { %s423_s12 = sshll.u32 %s416_s17, 4  ;;  %s2250_s14 = scalar_lea.sflag [#allocation3], %s412_s23  ;;  %s2244_s12 = int_to_ptr.vmem [resolvable:$true] %s423_s12 }
  0x58   : > { %s1964_s15 = scalar_lea.hbm %s2242_s27, 512  ;;  %p1966_p9 = pneg %p2246_p5 }
  0x59   : > { %p1965_p8 = scmp.ne.s32.totalorder %s2242_s27, %s1964_s15  ;;  %s1969_s16 = scalar_lea.hbm %s2447_s2, 1024 }
  0x5a   : > { %p1970_p6 = scmp.lt.s32.totalorder %s2242_s27, %s2447_s2  ;;  %p1971_p12 = scmp.lt.s32.totalorder %s1969_s16, %s1964_s15 }
  0x5b   : > { %p1967_p10 = pnand %p1966_p9, %p1965_p8 }
  0x5c   : > { %p1972_p13 = por %p1971_p12, %p1970_p6 }
  0x5d   : > { %p1968_p11 = pneg %p1967_p10 }
  0x5f   : > { %p1973_p0 = pnand %p1972_p13, %p1968_p11 }
  0x61   : > { %1976 = shalt.err (!%p1973_p0)
}
  0x62   : > { %s1977_s23 = scalar_lea.vmem %s2244_s12, 512  ;;  %s2049_s3 = smov [#allocation2]  }
  0x63   : > { %p1978_p2 = scmp.ne.s32.totalorder %s2244_s12, %s1977_s23  ;;  %s1982_s4 = sshll.u32 %s2049_s3, 4  ;;  %s1983_s4 = int_to_ptr.vmem [resolvable:$false] %s1982_s4 }
  0x64   : > { %s1984_s30 = scalar_lea.vmem %s1983_s4, 1024  ;;  %p1985_p10 = scmp.lt.s32.totalorder %s2244_s12, %s1983_s4 }
  0x65   : > { %p1980_p7 = pnand %p1978_p2, %p1966_p9  ;;  %p1986_p1 = scmp.lt.s32.totalorder %s1984_s30, %s1977_s23 }
  0x67   : > { %p1981_p8 = pneg %p1980_p7  ;;  %p1987_p4 = por %p1986_p1, %p1985_p10 }
  0x69   : > { %p1988_p3 = pnand %p1987_p4, %p1981_p8 }
  0x6b   : > { %1991 = shalt.err (!%p1988_p3)
}
  0x6c   : > { %s2474_s15 = smov 8   ;;  %s2475_s21 = smov 128  }
  0x6d   : > { %1769 = dma.hbm_to_vmem [thread:$0]  (!%p2246_p5), %s2242_s27, 512, %s2244_s12, %s2250_s14, %s2475_s21, %s2475_s21, %s2474_s15  }
  0x6e   : > { %p2476_p9 = scmp.ne.s32.totalorder %s2467_s25, 0 }
  0x6f   : > { %s437_s3 = sand.u32 (!%p2476_p9), 1, %s2030_s18   ;;  %p2477_p1 = scmp.ne.s32.totalorder (!%p2476_p9), %s2472_s22, 0 }
  0x70   : > { %435 = sbr.rel (%p2476_p9) target bundleno = 1366 (0x556), region = 60  ;;  %s1476_s4 = sshll.u32 (!%p2476_p9), %s437_s3, 5 }
  0x71   : > { %s438_s16 = scalar_lea.sflag (!%p2476_p9), [#allocation3], %s437_s3  ;;  %s2277_s26 = scalar_lea.vmem (!%p2476_p9), [#allocation2], %s1476_s4 }
  0x75   : > { %2009 = dma.done.wait (%p2477_p1), %s438_s16, 512  }
  0x76   : > { %2011 = vsyncadd (%p2477_p1), %s438_s16, 4294966784  ;;  %p2478_p3 = scmp.ne.s32.totalorder %s2466_s24, 0 }
  0x78   : > { %2013 = dma.done.wait (%p2478_p3), [#allocation5], 2304  }
  0x79   : > { %2015 = vsyncadd (%p2478_p3), [#allocation5], 4294964992 }
  0x7a   : > { %2017 = dma.done.wait (%p2478_p3), [#allocation8], 5120  }
  0x7b   : > { %2019 = vsyncadd (%p2478_p3), [#allocation8], 4294962176 }
  0x7c   : > { %2021 = dma.done.wait (%p2478_p3), [#allocation11], 2048  }
  0x7d   : > { %2023 = vsyncadd (%p2478_p3), [#allocation11], 4294965248  ;;  %s2479_s25 = sadd.s32 4294967295, %s2038_s20   ;;  %v2050_v0 = vmov 0   ;;  %vm589_vm0 = vcmask 130048   ;;  %v564_v1 = vld [vmem:[#allocation4 + $0x8] sm:$0xff] }
  0x7e   : > { %s1482_s14 = sshll.u32 %s2479_s25, 2  ;;  %1824 = vset.pattern.permute.xlu0 %v2050_v0  ;;  %1825 = vset.pattern.permute.xlu1 %v2050_v0  ;;  %v563_v2 = vld [vmem:[#allocation4] sm:$0xff]  ;;  %v710_v8 = vld [vmem:[#allocation6 + $0x78] sm:$0xff]  ;;  %v708_v13 = vld [vmem:[#allocation6 + $0x68] sm:$0xff]  ;;  %vm972_vm1 = vcmask 523264  }
  0x7f   : > { %p517_p4 = scmp.lt.s32.totalorder %s1482_s14, 7  ;;  %1582 = vmatprep.subr.mxu0 %v564_v1  ;;  %v709_v10 = vld [vmem:[#allocation6 + $0x70] sm:$0xff]  ;;  %1592 = vmatprep.subr.mxu1 %v710_v8  ;;  %v707_v14 = vld [vmem:[#allocation6 + $0x60] sm:$0xff]  ;;  %v706_v15 = vld [vmem:[#allocation6 + $0x58] sm:$0xff] }
  0x80   : > { %1583 = vmatpush3.msra.mxu0 %v564_v1  ;;  %1593 = vmatpush3.msra.mxu1 %v710_v8  ;;  %v705_v16 = vld [vmem:[#allocation6 + $0x50] sm:$0xff]  ;;  %v704_v17 = vld [vmem:[#allocation6 + $0x48] sm:$0xff]  ;;  %v703_v18 = vld [vmem:[#allocation6 + $0x40] sm:$0xff] }
  0x81   : > { %s2485_s14 = smov (!%p517_p4, %s1482_s14), 7  ;;  %1584 = vmatprep.subr.mxu0 %v563_v2  ;;  %1594 = vmatprep.subr.mxu1 %v709_v10  ;;  %v702_v19 = vld [vmem:[#allocation6 + $0x38] sm:$0xff]  ;;  %v701_v20 = vld [vmem:[#allocation6 + $0x30] sm:$0xff]  ;;  %v700_v21 = vld [vmem:[#allocation6 + $0x28] sm:$0xff] }
  0x82   : > { %s2300_s22 = sshll.u32 %s2485_s14, 3  ;;  %1585 = vmatpush3.msra.mxu0 %v563_v2  ;;  %1595 = vmatpush3.msra.mxu1 %v709_v10  ;;  %v699_v22 = vld [vmem:[#allocation6 + $0x20] sm:$0xff]  ;;  %v698_v23 = vld [vmem:[#allocation6 + $0x18] sm:$0xff]  ;;  %v697_v24 = vld [vmem:[#allocation6 + $0x10] sm:$0xff]  ;;  %s1503_s27 = sshll.u32 %s2485_s14, 4 }
  0x83   : > { %s520_s24 = scalar_lea.vmem %s2445_s0, %s2300_s22  ;;  %s526_s17 = scalar_lea.vmem %s2446_s1, %s2300_s22  ;;  %1596 = vmatprep.subr.mxu1 %v708_v13  ;;  %v696_v25 = vld [vmem:[#allocation6 + $0x8] sm:$0xff]  ;;  %v695_v26 = vld [vmem:[#allocation6] sm:$0xff]  ;;  %v831_v27 = vld [vmem:[#allocation7 + $0xf8] sm:$0xff] }
  0x84   : > { %v542_v3 = vld [vmem:[%s520_s24] sm:$0xff]  ;;  %v543_v4 = vld [vmem:[%s520_s24 + $0x8] sm:$0xff]  ;;  %v548_v6 = vld [vmem:[%s526_s17 + $0x10] sm:$0xff]  ;;  %1597 = vmatpush3.msra.mxu1 %v708_v13  ;;  %843 = vmatprep.subr.mxu0 %v831_v27  ;;  %s2342_s20 = scalar_lea.vmem %s2456_s11, %s1503_s27  ;;  %s533_s16 = scalar_lea.vmem %s2455_s10, %s2300_s22 }
  0x85   : > { %1586 = vmatprep.mubr.msk.f32.mxu0 %vm589_vm0, %v542_v3  ;;  %v546_v5 = vld [vmem:[%s526_s17] sm:$0xff]  ;;  %v544_v7 = vld [vmem:[%s520_s24 + $0x10] sm:$0xff]  ;;  %v547_v9 = vld [vmem:[%s526_s17 + $0x8] sm:$0xff]  ;;  %577 = vperm.xlu1 %1825, %v548_v6  }
  0x86   : > { %567 = vperm.xlu0 %1824, %v546_v5   ;;  %1587 = vmatmul.mubr.msk.f32.vlgmr.msra.gmra.mxu0 %vm589_vm0, %v543_v4  ;;  %v549_v11 = vld [vmem:[%s526_s17 + $0x18] sm:$0xff]  ;;  %v830_v28 = vld [vmem:[#allocation7 + $0xf0] sm:$0xff]  ;;  %v828_v30 = vld [vmem:[#allocation7 + $0xe0] sm:$0xff] }
  0x87   : > { %1589 = vmatprep.mubr.msk.f32.mxu0 %vm589_vm0, %v544_v7  ;;  %v545_v12 = vld [vmem:[%s520_s24 + $0x18] sm:$0xff]  ;;  %1598 = vmatprep.subr.mxu1 %v707_v14  ;;  %v827_v31 = vld [vmem:[#allocation7 + $0xd8] sm:$0xff]  ;;  %v826_v32 = vld [vmem:[#allocation7 + $0xd0] sm:$0xff] }
  0x88   : > { %1599 = vmatpush3.msra.mxu1 %v707_v14  ;;  %v829_v29 = vld [vmem:[#allocation7 + $0xe8] sm:$0xff]  ;;  %844 = vmatpush1.msra.mxu0 %v830_v28  ;;  %v824_v34 = vld [vmem:[#allocation7 + $0xc0] sm:$0xff]  ;;  %v823_v35 = vld [vmem:[#allocation7 + $0xb8] sm:$0xff] }
  0x89   : > { %582 = vperm.xlu1 %1825, %v549_v11   ;;  %1600 = vmatprep.subr.mxu1 %v706_v15  ;;  %v825_v33 = vld [vmem:[#allocation7 + $0xc8] sm:$0xff]  ;;  %v822_v36 = vld [vmem:[#allocation7 + $0xb0] sm:$0xff]  ;;  %v820_v38 = vld [vmem:[#allocation7 + $0xa0] sm:$0xff] }
  0x8a   : > { %572 = vperm.xlu0 %1824, %v547_v9   ;;  %1590 = vmatmul.mubr.msk.f32.gmra.mxu0 %vm589_vm0, %v545_v12  ;;  %v821_v37 = vld [vmem:[#allocation7 + $0xa8] sm:$0xff]  ;;  %v819_v39 = vld [vmem:[#allocation7 + $0x98] sm:$0xff]  ;;  %v818_v40 = vld [vmem:[#allocation7 + $0x90] sm:$0xff] }
  0x8b   : > { %1601 = vmatpush3.msra.mxu1 %v706_v15  ;;  %845 = vmatprep.subr.mxu0 %v829_v29  ;;  %v817_v41 = vld [vmem:[#allocation7 + $0x88] sm:$0xff]  ;;  %v816_v42 = vld [vmem:[#allocation7 + $0x80] sm:$0xff]  ;;  %v815_v43 = vld [vmem:[#allocation7 + $0x78] sm:$0xff] }
  0x8c   : > { %1602 = vmatprep.subr.mxu1 %v705_v16  ;;  %846 = vmatpush1.msra.mxu0 %v828_v30  ;;  %v814_v44 = vld [vmem:[#allocation7 + $0x70] sm:$0xff]  ;;  %v813_v45 = vld [vmem:[#allocation7 + $0x68] sm:$0xff]  ;;  %v812_v46 = vld [vmem:[#allocation7 + $0x60] sm:$0xff] }
  0x8d   : > { %1603 = vmatpush3.msra.mxu1 %v705_v16  ;;  %847 = vmatprep.subr.mxu0 %v827_v31  ;;  %v811_v47 = vld [vmem:[#allocation7 + $0x58] sm:$0xff]  ;;  %v810_v48 = vld [vmem:[#allocation7 + $0x50] sm:$0xff]  ;;  %v809_v49 = vld [vmem:[#allocation7 + $0x48] sm:$0xff] }
  0x8e   : > { %1604 = vmatprep.subr.mxu1 %v704_v17  ;;  %848 = vmatpush1.msra.mxu0 %v826_v32  ;;  %v808_v50 = vld [vmem:[#allocation7 + $0x40] sm:$0xff]  ;;  %v807_v51 = vld [vmem:[#allocation7 + $0x38] sm:$0xff]  ;;  %v555_v54 = vld [vmem:[%s2454_s9 + $0x1] ss:$0 sm:$0xff] }
  0x8f   : > { %1605 = vmatpush3.msra.mxu1 %v704_v17  ;;  %849 = vmatprep.subr.mxu0 %v825_v33  ;;  %v554_v60 = vld [vmem:[%s2454_s9] ss:$0 sm:$0xff]  ;;  %v805_v15 = vld [vmem:[#allocation7 + $0x28] sm:$0xff]  ;;  %v804_v16 = vld [vmem:[#allocation7 + $0x20] sm:$0xff] }
  0x90   : > { %1606 = vmatprep.subr.mxu1 %v703_v18  ;;  %850 = vmatpush1.msra.mxu0 %v824_v34  ;;  %v806_v14 = vld [vmem:[#allocation7 + $0x30] sm:$0xff]  ;;  %v803_v17 = vld [vmem:[#allocation7 + $0x18] sm:$0xff] }
  0x91   : > { %1607 = vmatpush3.msra.mxu1 %v703_v18  ;;  %851 = vmatprep.subr.mxu0 %v823_v35  ;;  %v802_v18 = vld [vmem:[#allocation7 + $0x10] sm:$0xff]  ;;  %v967_v35 = vld [vmem:[#allocation9 + $0x38] sm:$0xff] }
  0x92   : > { %1608 = vmatprep.subr.mxu1 %v702_v19  ;;  %852 = vmatpush1.msra.mxu0 %v822_v36  ;;  %v966_v36 = vld [vmem:[#allocation9 + $0x30] sm:$0xff] }
  0x93   : > { %1609 = vmatpush3.msra.mxu1 %v702_v19  ;;  %853 = vmatprep.subr.mxu0 %v821_v37  ;;  %v801_v19 = vld [vmem:[#allocation7 + $0x8] sm:$0xff] }
  0x94   : > { %1610 = vmatprep.subr.mxu1 %v701_v20  ;;  %854 = vmatpush1.msra.mxu0 %v820_v38  ;;  %v965_v37 = vld [vmem:[#allocation9 + $0x28] sm:$0xff]  ;;  %v964_v38 = vld [vmem:[#allocation9 + $0x20] sm:$0xff] }
  0x95   : > { %1611 = vmatpush3.msra.mxu1 %v701_v20  ;;  %855 = vmatprep.subr.mxu0 %v819_v39  ;;  %v800_v20 = vld [vmem:[#allocation7] sm:$0xff]  ;;  %v963_v39 = vld [vmem:[#allocation9 + $0x18] sm:$0xff] }
  0x96   : > { %1612 = vmatprep.subr.mxu1 %v700_v21  ;;  %856 = vmatpush1.msra.mxu0 %v818_v40  ;;  %v962_v40 = vld [vmem:[#allocation9 + $0x10] sm:$0xff] }
  0x97   : > { %1613 = vmatpush3.msra.mxu1 %v700_v21  ;;  %857 = vmatprep.subr.mxu0 %v817_v41  ;;  %v2051_v21 = vmov 0.0   ;;  %v961_v41 = vld [vmem:[#allocation9 + $0x8] sm:$0xff] }
  0x98   : > { %1614 = vmatprep.subr.mxu1 %v699_v22  ;;  %858 = vmatpush1.msra.mxu0 %v816_v42  ;;  %v960_v42 = vld [vmem:[#allocation9] sm:$0xff] }
  0x99   : > { %1615 = vmatpush3.msra.mxu1 %v699_v22  ;;  %859 = vmatprep.subr.mxu0 %v815_v43  ;;  %v1093_v43 = vld [vmem:[#allocation10 + $0x78] sm:$0xff] }
  0x9a   : > { %1616 = vmatprep.subr.mxu1 %v698_v23  ;;  %860 = vmatpush1.msra.mxu0 %v814_v44  ;;  %v1092_v44 = vld [vmem:[#allocation10 + $0x70] sm:$0xff] }
  0x9b   : > { %1617 = vmatpush3.msra.mxu1 %v698_v23  ;;  %861 = vmatprep.subr.mxu0 %v813_v45  ;;  %v556_v23 = vld [vmem:[%s2454_s9 + $0x2] ss:$0 sm:$0xff]  ;;  %v1091_v45 = vld [vmem:[#allocation10 + $0x68] sm:$0xff] }
  0x9c   : > { %1618 = vmatprep.subr.mxu1 %v697_v24  ;;  %862 = vmatpush1.msra.mxu0 %v812_v46  ;;  %v1090_v46 = vld [vmem:[#allocation10 + $0x60] sm:$0xff] }
  0x9d   : > { %1619 = vmatpush3.msra.mxu1 %v697_v24  ;;  %863 = vmatprep.subr.mxu0 %v811_v47  ;;  %v1089_v47 = vld [vmem:[#allocation10 + $0x58] sm:$0xff] }
  0x9e   : > { %1620 = vmatprep.subr.mxu1 %v696_v25  ;;  %864 = vmatpush1.msra.mxu0 %v810_v48  ;;  %v1088_v48 = vld [vmem:[#allocation10 + $0x50] sm:$0xff] }
  0x9f   : > { %1621 = vmatpush3.msra.mxu1 %v696_v25  ;;  %865 = vmatprep.subr.mxu0 %v809_v49  ;;  %v1087_v49 = vld [vmem:[#allocation10 + $0x48] sm:$0xff] }
  0xa0   : > { %1622 = vmatprep.subr.mxu1 %v695_v26  ;;  %866 = vmatpush1.msra.mxu0 %v808_v50  ;;  %v1086_v50 = vld [vmem:[#allocation10 + $0x40] sm:$0xff] }
  0xa1   : > { %1623 = vmatpush3.msra.mxu1 %v695_v26  ;;  %867 = vmatprep.subr.mxu0 %v807_v51  ;;  %v1085_v51 = vld [vmem:[#allocation10 + $0x38] sm:$0xff] }
  0xa2   : > { %868 = vmatpush1.msra.mxu0 %v806_v14  ;;  %907 = vmatprep.mubr.f32.mxu0 %v2051_v21 }
  0xa3   : > { %869 = vmatprep.subr.mxu0 %v805_v15  ;;  %1630 = vmatprep.subr.mxu1 %v967_v35 }
  0xa4   : > { %870 = vmatpush1.msra.mxu0 %v804_v16 }
  0xa5   : > { %871 = vmatprep.subr.mxu0 %v803_v17 }
  0xa6   : > { %872 = vmatpush1.msra.mxu0 %v802_v18 }
  0xa7   : > { %873 = vmatprep.subr.mxu0 %v801_v19 }
  0xa8   : > { %874 = vmatpush1.msra.mxu0 %v800_v20 }
  0xa9   : > { %1652 = vmatprep.subr.mxu0 %v1093_v43 }
 0x100   : > { %v2316_v53 = vpop.permute.xlu1 %577 }
 0x101   : > { %v2314_v52 = vpop.permute.xlu0 %567  ;;  %v587_v0 = vmul.f32 %v2316_v53, %v555_v54 }
 0x102   : > { %v585_v59 = vmul.f32 %v2314_v52, %v555_v54 }
 0x104   : > { %v2324_v57 = vpop.permute.xlu1 %582 }
 0x105   : > { %v2321_v55 = vpop.permute.xlu0 %572  ;;  %v588_v62 = vmul.f32 %v2324_v57, %v555_v54 }
 0x106   : > { %v586_v56 = vmul.f32 %v2321_v55, %v555_v54  ;;  %v1084_v54 = vld [vmem:[#allocation10 + $0x30] sm:$0xff] }
 0x146   : > { %v1588_v58 = vpop.f32.mrf.mxu0 }
 0x147   : > { %v674_v61 = vadd.f32 %v1588_v58, %v586_v56  ;;  %v1083_v56 = vld [vmem:[#allocation10 + $0x28] sm:$0xff]  ;;  %v833_v58 = vlaneseq }
 0x148   : > { %v668_v63 = vpop.f32.mrf.mxu0 }
 0x149   : > { %v669_v1 = vadd.f32 %v668_v63, %v585_v59  ;;  %v688_v2 = vadd.f32 %v674_v61, %v554_v60  ;;  %v834_v59 = vshrl.u32 %v833_v58, 7  ;;  %v1491_v61 = vld [vmem:[%s2454_s9 + $0x3] ss:$8 sm:$0x3]  ;;  %v1190_v58 = vld [vmem:[%s2453_s8 + $0x38] sm:$0xff] }
 0x14a   : > { %v1591_v3 = vpop.f32.mrf.mxu0 }
 0x14b   : > { %v684_v4 = vadd.f32 %v1591_v3, %v588_v62  ;;  %v687_v5 = vadd.f32 %v669_v1, %v554_v60  ;;  %v692_v10 = vmax.f32 %v688_v2, 0.0  ;;  %v839_v62 = vsub.s32 1, %v834_v59 }
 0x14c   : > { %v678_v6 = vpop.f32.mrf.mxu0 }
 0x14d   : > { %v679_v7 = vadd.f32 %v678_v6, %v587_v0  ;;  %v691_v8 = vmax.f32 %v687_v5, 0.0  ;;  %v690_v9 = vadd.f32 %v684_v4, %v554_v60  ;;  %v840_v0 = vrot.slane %v1491_v61, %v839_v62  ;;  %v560_v62 = vld [vmem:[%s2454_s9 + $0x5] ss:$0 sm:$0xff] }
 0x14f   : > { %v689_v11 = vadd.f32 %v679_v7, %v554_v60  ;;  %1624 = vmatprep.mubr.f32.mxu1 %v691_v8  ;;  %v694_v12 = vmax.f32 %v690_v9, 0.0  ;;  %v835_v60 = vsub.s32 0, %v834_v59  ;;  %v1189_v59 = vld [vmem:[%s2453_s8 + $0x30] sm:$0xff] }
 0x150   : > { %1625 = vmatmul.mubr.f32.vlgmr.msra.gmra.mxu1 %v692_v10 }
 0x151   : > { %v693_v13 = vmax.f32 %v689_v11, 0.0  ;;  %1631 = vmatpush3.msra.mxu1 %v967_v35  ;;  %v836_v63 = vrot.slane %v1491_v61, %v835_v60  ;;  %v1188_v60 = vld [vmem:[%s2453_s8 + $0x28] sm:$0xff]  ;;  %v1187_v61 = vld [vmem:[%s2453_s8 + $0x20] sm:$0xff] }
 0x152   : > { %1632 = vmatprep.subr.mxu1 %v966_v36 }
 0x153   : > { %1627 = vmatprep.mubr.f32.mxu1 %v693_v13  ;;  %1633 = vmatpush3.msra.mxu1 %v966_v36  ;;  %v553_v36 = vld [vmem:[%s2277_s26 + $0x18] sm:$0xff] }
 0x154   : > { %1628 = vmatmul.mubr.f32.gmra.mxu1 %v694_v12  ;;  %1634 = vmatprep.subr.mxu1 %v965_v37 }
 0x155   : > { %1635 = vmatpush3.msra.mxu1 %v965_v37 }
 0x156   : > { %1636 = vmatprep.subr.mxu1 %v964_v38 }
 0x157   : > { %1637 = vmatpush3.msra.mxu1 %v964_v38 }
 0x158   : > { %1638 = vmatprep.subr.mxu1 %v963_v39 }
 0x159   : > { %1639 = vmatpush3.msra.mxu1 %v963_v39 }
 0x15a   : > { %1640 = vmatprep.subr.mxu1 %v962_v40 }
 0x15b   : > { %1641 = vmatpush3.msra.mxu1 %v962_v40 }
 0x15c   : > { %1642 = vmatprep.subr.mxu1 %v961_v41 }
 0x15d   : > { %1643 = vmatpush3.msra.mxu1 %v961_v41  ;;  %v1082_v41 = vld [vmem:[#allocation10 + $0x20] sm:$0xff] }
 0x15e   : > { %1644 = vmatprep.subr.mxu1 %v960_v42 }
 0x15f   : > { %1645 = vmatpush3.msra.mxu1 %v960_v42  ;;  %v1081_v42 = vld [vmem:[#allocation10 + $0x18] sm:$0xff] }
 0x210   : > { %v1626_v22 = vpop.f32.mrf.mxu1 }
 0x211   : > { %v783_v27 = vadd.f32 %v1626_v22, %v556_v23 }
 0x212   : > { %v777_v24 = vpop.f32.mrf.mxu1 }
 0x213   : > { %v778_v25 = vadd.f32 %v777_v24, %v556_v23  ;;  %v797_v30 = vmax.f32 %v783_v27, 0.0 }
 0x214   : > { %v1629_v26 = vpop.f32.mrf.mxu1 }
 0x215   : > { %v796_v28 = vmax.f32 %v778_v25, 0.0  ;;  %v793_v32 = vadd.f32 %v1629_v26, %v556_v23  ;;  %v550_v25 = vld [vmem:[%s2277_s26] sm:$0xff] }
 0x216   : > { %v787_v29 = vpop.f32.mrf.mxu1 }
 0x217   : > { %908 = vmatmul.mubr.f32.vlgmr.msra.gmra.mxu0 %v796_v28  ;;  %v788_v31 = vadd.f32 %v787_v29, %v556_v23  ;;  %v799_v34 = vmax.f32 %v793_v32, 0.0  ;;  %v551_v28 = vld [vmem:[%s2277_s26 + $0x8] sm:$0xff]  ;;  %v552_v32 = vld [vmem:[%s2277_s26 + $0x10] sm:$0xff] }
 0x218   : > { %913 = vmatprep.mubr.f32.mxu0 %v2051_v21  ;;  %1653 = vmatpush3.msra.mxu0 %v1093_v43  ;;  %v1080_v43 = vld [vmem:[#allocation10 + $0x10] sm:$0xff] }
 0x219   : > { %v798_v33 = vmax.f32 %v788_v31, 0.0  ;;  %1654 = vmatprep.subr.mxu0 %v1092_v44 }
 0x21a   : > { %1655 = vmatpush3.msra.mxu0 %v1092_v44  ;;  %v1079_v44 = vld [vmem:[#allocation10 + $0x8] sm:$0xff] }
 0x21b   : > { %914 = vmatmul.mubr.f32.gmra.mxu0 %v797_v30  ;;  %1656 = vmatprep.subr.mxu0 %v1091_v45 }
 0x21c   : > { %919 = vmatprep.mubr.f32.mxu0 %v2051_v21  ;;  %1657 = vmatpush3.msra.mxu0 %v1091_v45  ;;  %v1078_v45 = vld [vmem:[#allocation10] sm:$0xff] }
 0x21d   : > { %1658 = vmatprep.subr.mxu0 %v1090_v46 }
 0x21e   : > { %1659 = vmatpush3.msra.mxu0 %v1090_v46  ;;  %v1198_v46 = vld [vmem:[%s2453_s8 + $0x78] sm:$0xff] }
 0x21f   : > { %920 = vmatmul.mubr.f32.gmra.mxu0 %v798_v33  ;;  %1660 = vmatprep.subr.mxu0 %v1089_v47 }
 0x220   : > { %925 = vmatprep.mubr.f32.mxu0 %v2051_v21  ;;  %1661 = vmatpush3.msra.mxu0 %v1089_v47  ;;  %v1197_v47 = vld [vmem:[%s2453_s8 + $0x70] sm:$0xff] }
 0x221   : > { %1662 = vmatprep.subr.mxu0 %v1088_v48  ;;  %1690 = vmatprep.subr.mxu1 %v1198_v46 }
 0x222   : > { %1663 = vmatpush3.msra.mxu0 %v1088_v48  ;;  %v1196_v48 = vld [vmem:[%s2453_s8 + $0x68] sm:$0xff] }
 0x223   : > { %926 = vmatmul.mubr.f32.gmra.mxu0 %v799_v34  ;;  %1664 = vmatprep.subr.mxu0 %v1087_v49 }
 0x224   : > { %1665 = vmatpush3.msra.mxu0 %v1087_v49  ;;  %v1195_v49 = vld [vmem:[%s2453_s8 + $0x60] sm:$0xff] }
 0x225   : > { %1666 = vmatprep.subr.mxu0 %v1086_v50 }
 0x226   : > { %1667 = vmatpush3.msra.mxu0 %v1086_v50  ;;  %v1194_v50 = vld [vmem:[%s2453_s8 + $0x58] sm:$0xff] }
 0x227   : > { %1668 = vmatprep.subr.mxu0 %v1085_v51 }
 0x228   : > { %1669 = vmatpush3.msra.mxu0 %v1085_v51  ;;  %v1193_v51 = vld [vmem:[%s2453_s8 + $0x50] sm:$0xff] }
 0x229   : > { %1670 = vmatprep.subr.mxu0 %v1084_v54 }
 0x22a   : > { %1671 = vmatpush3.msra.mxu0 %v1084_v54  ;;  %v1192_v54 = vld [vmem:[%s2453_s8 + $0x48] sm:$0xff] }
 0x22b   : > { %1672 = vmatprep.subr.mxu0 %v1083_v56 }
 0x22c   : > { %1673 = vmatpush3.msra.mxu0 %v1083_v56  ;;  %v1191_v56 = vld [vmem:[%s2453_s8 + $0x40] sm:$0xff] }
 0x22d   : > { %1674 = vmatprep.subr.mxu0 %v1082_v41 }
 0x22e   : > { %1675 = vmatpush3.msra.mxu0 %v1082_v41 }
 0x22f   : > { %1676 = vmatprep.subr.mxu0 %v1081_v42 }
 0x230   : > { %1677 = vmatpush3.msra.mxu0 %v1081_v42 }
 0x231   : > { %1678 = vmatprep.subr.mxu0 %v1080_v43 }
 0x232   : > { %1679 = vmatpush3.msra.mxu0 %v1080_v43 }
 0x233   : > { %1680 = vmatprep.subr.mxu0 %v1079_v44 }
 0x234   : > { %1681 = vmatpush3.msra.mxu0 %v1079_v44 }
 0x235   : > { %1682 = vmatprep.subr.mxu0 %v1078_v45 }
 0x236   : > { %1683 = vmatpush3.msra.mxu0 %v1078_v45 }
 0x2d7   : > { %v909_v1 = vpop.f32.mrf.mxu0 }
 0x2d8   : > { %v910_v2 = vadd.f32 %v909_v1, %v836_v63  ;;  %v968_v1 = vmul.f32 %v2314_v52, %v560_v62 }
 0x2d9   : > { %v911_v3 = vpop.f32.mrf.mxu0 }
 0x2da   : > { %932 = vst [vmem:[%s2342_s20] sm:$0xff] %v910_v2  ;;  %v912_v4 = vadd.f32 %v911_v3, %v840_v0 }
 0x2db   : > { %v915_v5 = vpop.f32.mrf.mxu0 }
 0x2dc   : > { %933 = vst [vmem:[%s2342_s20 + $0x8] sm:$0xff] %v912_v4  ;;  %v940_v6 = vmul.f32 0.5, %v912_v4  ;;  %v916_v7 = vadd.f32 %v915_v5, %v836_v63 }
 0x2dd   : > { %v917_v8 = vpop.f32.mrf.mxu0 }
 0x2de   : > { %v944_v9 = vmul.f32 1.442695, %v940_v6  ;;  %934 = vst [vmem:[%s2342_s20 + $0x10] sm:$0xff] %v916_v7  ;;  %v918_v10 = vadd.f32 %v917_v8, %v840_v0  ;;  %v971_v8 = vmul.f32 %v2324_v57, %v560_v62  ;;  %v1186_v57 = vld [vmem:[%s2453_s8 + $0x18] sm:$0xff] }
 0x2df   : > { %v921_v11 = vpop.f32.mrf.mxu0 }
 0x2e0   : > { %1826 = vpow2.f32 %v944_v9  ;;  %935 = vst [vmem:[%s2342_s20 + $0x18] sm:$0xff] %v918_v10  ;;  %v941_v12 = vmul.f32 0.5, %v918_v10  ;;  %v922_v13 = vadd.f32 %v921_v11, %v836_v63 }
 0x2e1   : > { %v923_v14 = vpop.f32.mrf.mxu0 }
 0x2e2   : > { %v946_v15 = vmul.f32 1.442695, %v941_v12  ;;  %936 = vst [vmem:[%s2342_s20 + $0x20] sm:$0xff] %v922_v13  ;;  %v924_v16 = vadd.f32 %v923_v14, %v840_v0  ;;  %v970_v12 = vmul.f32 %v2316_v53, %v560_v62  ;;  %v1185_v53 = vld [vmem:[%s2453_s8 + $0x10] sm:$0xff] }
 0x2e3   : > { %v927_v17 = vpop.f32.mrf.mxu0 }
 0x2e4   : > { %1828 = vpow2.f32 %v946_v15  ;;  %937 = vst [vmem:[%s2342_s20 + $0x28] sm:$0xff] %v924_v16  ;;  %v942_v18 = vmul.f32 0.5, %v924_v16  ;;  %v928_v19 = vadd.f32 %v927_v17, %v836_v63  ;;  %v969_v63 = vmul.f32 %v2321_v55, %v560_v62 }
 0x2e5   : > { %v929_v20 = vpop.f32.mrf.mxu0 }
 0x2e6   : > { %v948_v21 = vmul.f32 1.442695, %v942_v18  ;;  %938 = vst [vmem:[%s2342_s20 + $0x30] sm:$0xff] %v928_v19  ;;  %v930_v22 = vadd.f32 %v929_v20, %v840_v0  ;;  %v1184_v18 = vld [vmem:[%s2453_s8 + $0x8] sm:$0xff]  ;;  %v561_v20 = vld [vmem:[%s2454_s9 + $0x6] ss:$0 sm:$0xff] }
 0x2e8   : > { %1830 = vpow2.f32 %v948_v21  ;;  %939 = vst [vmem:[%s2342_s20 + $0x38] sm:$0xff] %v930_v22  ;;  %v943_v23 = vmul.f32 0.5, %v930_v22 }
 0x2ea   : > { %v950_v24 = vmul.f32 1.442695, %v943_v23 }
 0x2ec   : > { %1832 = vpow2.f32 %v950_v24 }
 0x2ed   : > { %v1827_v26 = vpop.eup %1826 }
 0x2ee   : > { %v952_v27 = vmul.f32 %v1827_v26, %v550_v25 }
 0x2f0   : > { %v956_v29 = vadd.f32 %v952_v27, %v910_v2  ;;  %v559_v2 = vld [vmem:[%s2454_s9 + $0x4] ss:$0 sm:$0xff] }
 0x2f1   : > { %v1829_v30 = vpop.eup %1828 }
 0x2f2   : > { %v953_v31 = vmul.f32 %v1829_v30, %v551_v28  ;;  %1646 = vmatprep.mubr.msk.f32.mxu1 %vm972_vm1, %v956_v29 }
 0x2f4   : > { %v957_v33 = vadd.f32 %v953_v31, %v916_v7 }
 0x2f5   : > { %v1831_v34 = vpop.eup %1830 }
 0x2f6   : > { %1647 = vmatmul.mubr.msk.f32.vlgmr.msra.gmra.mxu1 %vm972_vm1, %v957_v33  ;;  %v954_v35 = vmul.f32 %v1831_v34, %v552_v32  ;;  %v562_v34 = vld [vmem:[%s2454_s9 + $0x7] ss:$0 sm:$0xff] }
 0x2f7   : > { %1691 = vmatpush3.msra.mxu1 %v1198_v46 }
 0x2f8   : > { %v958_v37 = vadd.f32 %v954_v35, %v922_v13  ;;  %1692 = vmatprep.subr.mxu1 %v1197_v47 }
 0x2f9   : > { %v1833_v38 = vpop.eup %1832  ;;  %1693 = vmatpush3.msra.mxu1 %v1197_v47 }
 0x2fa   : > { %1649 = vmatprep.mubr.msk.f32.mxu1 %vm972_vm1, %v958_v37  ;;  %v955_v39 = vmul.f32 %v1833_v38, %v553_v36  ;;  %1694 = vmatprep.subr.mxu1 %v1196_v48 }
 0x2fb   : > { %1695 = vmatpush3.msra.mxu1 %v1196_v48 }
 0x2fc   : > { %v959_v40 = vadd.f32 %v955_v39, %v928_v19  ;;  %1696 = vmatprep.subr.mxu1 %v1195_v49  ;;  %v1183_v19 = vld [vmem:[%s2453_s8] sm:$0xff] }
 0x2fd   : > { %1697 = vmatpush3.msra.mxu1 %v1195_v49 }
 0x2fe   : > { %1650 = vmatmul.mubr.msk.f32.gmra.mxu1 %vm972_vm1, %v959_v40  ;;  %1698 = vmatprep.subr.mxu1 %v1194_v50 }
 0x2ff   : > { %1699 = vmatpush3.msra.mxu1 %v1194_v50 }
 0x300   : > { %1700 = vmatprep.subr.mxu1 %v1193_v51 }
 0x301   : > { %1701 = vmatpush3.msra.mxu1 %v1193_v51 }
 0x302   : > { %1702 = vmatprep.subr.mxu1 %v1192_v54 }
 0x303   : > { %1703 = vmatpush3.msra.mxu1 %v1192_v54 }
 0x304   : > { %1704 = vmatprep.subr.mxu1 %v1191_v56 }
 0x305   : > { %1705 = vmatpush3.msra.mxu1 %v1191_v56 }
 0x306   : > { %1706 = vmatprep.subr.mxu1 %v1190_v58 }
 0x307   : > { %1707 = vmatpush3.msra.mxu1 %v1190_v58 }
 0x308   : > { %1708 = vmatprep.subr.mxu1 %v1189_v59 }
 0x309   : > { %1709 = vmatpush3.msra.mxu1 %v1189_v59 }
 0x30a   : > { %1710 = vmatprep.subr.mxu1 %v1188_v60 }
 0x30b   : > { %1711 = vmatpush3.msra.mxu1 %v1188_v60 }
 0x30c   : > { %1712 = vmatprep.subr.mxu1 %v1187_v61 }
 0x30d   : > { %1713 = vmatpush3.msra.mxu1 %v1187_v61 }
 0x30e   : > { %1714 = vmatprep.subr.mxu1 %v1186_v57 }
 0x30f   : > { %1715 = vmatpush3.msra.mxu1 %v1186_v57 }
 0x310   : > { %1716 = vmatprep.subr.mxu1 %v1185_v53 }
 0x311   : > { %1717 = vmatpush3.msra.mxu1 %v1185_v53 }
 0x312   : > { %1718 = vmatprep.subr.mxu1 %v1184_v18 }
 0x313   : > { %1719 = vmatpush3.msra.mxu1 %v1184_v18 }
 0x314   : > { %1720 = vmatprep.subr.mxu1 %v1183_v19 }
 0x315   : > { %1721 = vmatpush3.msra.mxu1 %v1183_v19 }
 0x3b6   : > { %v1648_v0 = vpop.f32.mrf.mxu1 }
 0x3b7   : > { %v1057_v3 = vadd.f32 %v1648_v0, %v969_v63 }
 0x3b8   : > { %v1051_v4 = vpop.f32.mrf.mxu1 }
 0x3b9   : > { %v1052_v5 = vadd.f32 %v1051_v4, %v968_v1  ;;  %v1071_v6 = vadd.f32 %v1057_v3, %v559_v2 }
 0x3bb   : > { %v1070_v7 = vadd.f32 %v1052_v5, %v559_v2  ;;  %v1075_v10 = vmax.f32 %v1071_v6, 0.0 }
 0x3bd   : > { %v1074_v9 = vmax.f32 %v1070_v7, 0.0 }
 0x3be   : > { %v1651_v11 = vpop.f32.mrf.mxu1 }
 0x3bf   : > { %v1067_v55 = vadd.f32 %v1651_v11, %v971_v8  ;;  %1684 = vmatprep.mubr.f32.mxu0 %v1074_v9 }
 0x3c0   : > { %v1061_v13 = vpop.f32.mrf.mxu1  ;;  %1685 = vmatmul.mubr.f32.vlgmr.msra.gmra.mxu0 %v1075_v10 }
 0x3c1   : > { %v1062_v52 = vadd.f32 %v1061_v13, %v970_v12  ;;  %v1073_v14 = vadd.f32 %v1067_v55, %v559_v2 }
 0x3c3   : > { %v1072_v15 = vadd.f32 %v1062_v52, %v559_v2  ;;  %v1077_v17 = vmax.f32 %v1073_v14, 0.0 }
 0x3c5   : > { %v1076_v16 = vmax.f32 %v1072_v15, 0.0 }
 0x3c7   : > { %1687 = vmatprep.mubr.f32.mxu0 %v1076_v16 }
 0x3c8   : > { %1688 = vmatmul.mubr.f32.gmra.mxu0 %v1077_v17 }
 0x480   : > { %v1686_v21 = vpop.f32.mrf.mxu0 }
 0x481   : > { %v1166_v22 = vadd.f32 %v1686_v21, %v561_v20 }
 0x482   : > { %v1160_v23 = vpop.f32.mrf.mxu0 }
 0x483   : > { %v1161_v24 = vadd.f32 %v1160_v23, %v561_v20  ;;  %v1180_v26 = vmax.f32 %v1166_v22, 0.0 }
 0x485   : > { %v1179_v25 = vmax.f32 %v1161_v24, 0.0 }
 0x487   : > { %1722 = vmatprep.mubr.f32.mxu1 %v1179_v25 }
 0x488   : > { %v1689_v27 = vpop.f32.mrf.mxu0  ;;  %1723 = vmatmul.mubr.f32.vlgmr.msra.gmra.mxu1 %v1180_v26 }
 0x489   : > { %v1176_v28 = vadd.f32 %v1689_v27, %v561_v20 }
 0x48a   : > { %v1170_v29 = vpop.f32.mrf.mxu0 }
 0x48b   : > { %v1171_v30 = vadd.f32 %v1170_v29, %v561_v20  ;;  %v1182_v32 = vmax.f32 %v1176_v28, 0.0 }
 0x48d   : > { %v1181_v31 = vmax.f32 %v1171_v30, 0.0 }
 0x48f   : > { %1725 = vmatprep.mubr.f32.mxu1 %v1181_v31 }
 0x490   : > { %1726 = vmatmul.mubr.f32.gmra.mxu1 %v1182_v32 }
 0x548   : > { %v1724_v33 = vpop.f32.mrf.mxu1 }
 0x549   : > { %v1271_v37 = vadd.f32 %v1724_v33, %v562_v34 }
 0x54a   : > { %v1265_v35 = vpop.f32.mrf.mxu1 }
 0x54b   : > { %v1266_v36 = vadd.f32 %v1265_v35, %v562_v34  ;;  %1285 = vst.msk [vmem:[%s533_s16 + $0x8] sm:$0xff] %vm589_vm0, %v1271_v37 }
 0x54d   : > { %1284 = vst.msk [vmem:[%s533_s16] sm:$0xff] %vm589_vm0, %v1266_v36 }
 0x550   : > { %v1727_v38 = vpop.f32.mrf.mxu1 }
 0x551   : > { %v1281_v41 = vadd.f32 %v1727_v38, %v562_v34 }
 0x552   : > { %v1275_v39 = vpop.f32.mrf.mxu1 }
 0x553   : > { %v1276_v40 = vadd.f32 %v1275_v39, %v562_v34  ;;  %1287 = vst.msk [vmem:[%s533_s16 + $0x18] sm:$0xff] %vm589_vm0, %v1281_v41 }
 0x555   : > { %1286 = vst.msk [vmem:[%s533_s16 + $0x10] sm:$0xff] %vm589_vm0, %v1276_v40 }
 0x556 PF: > { %p25_p5 = scmp.ge.s32.totalorder %s2217_s28, 4   ;;  %s2480_s17 = smov %s2030_s18 }
 0x557   : > { %s2481_s18 = smov %s2034_s19  ;;  %s2482_s19 = smov %s2228_s13 }
 0x558   : > { %s2483_s20 = smov %s2217_s28  ;;  %27 = sbr.rel (!%p25_p5) target bundleno = 9 (0x9), region = 139 }
 0x55d   :  { %1329 = vsyncpa [#allocation3], 1 }
 0x55e   :  { %1331 = vsyncpa [#allocation3 + $0x1], 1 }
 0x55f   :  { %1332 = vsyncpa [#allocation5], 1 }
 0x560   :  { %1333 = vsyncpa [#allocation8], 1 }
 0x561   :  { %1334 = vsyncpa [#allocation11], 1 }

</bundles_post_ra>
